<compile_context>
chip_gen: v5e
topology: v5e:2x2
jax: 0.10.0
libtpu: 0.0.40
codegen_flags: <defaults>
</compile_context>

<pallas_src>
import jax
import jax.numpy as jnp
from jax import lax
from jax.experimental import pallas as pl
from jax.experimental.pallas import tpu as pltpu

# ----------------------------- problem sizes -----------------------------
NL = 8          # number of "left" (destination) nodes
NR = 8          # number of "right" (source) nodes
E = 16          # number of edges
C = 32          # in_channels == out_channels
H = 2           # heads
HC = H * C
NEG_SLOPE = 0.2
LANES = 128

assert NR + NL == 16 and NR + NL + E == 32        # packed data-slab layout relies on this
assert HC + 2 * H + C <= LANES and 3 * C <= LANES


# ------------------------------ Pallas kernel ------------------------------
def gat_kernel(data_ref, w1_ref, w2_ref, b_ref, out_ref):
    data = data_ref[...]            # [32,128] bf16  (right | left | edge feats | edge idx)
    w1 = w1_ref[...]                # [64,128] bf16  (block-diag fused input projection)
    w2 = w2_ref[...]                # [64,128] bf16  (w_lt | w_fmf | w_pc_x)
    b = b_ref[...]                  # [ 8,128] f32   (b_gat | b_lt | b_fmf ; b_pc)

    # ---- fused input-side projection: ONE MXU matmul ----
    # data rows 0:8 = right (cols 0:32), 8:16 = left (cols 0:32), 16:32 = edge feats (cols 32:64)
    proj = jnp.dot(data[:, 0:2 * C], w1, preferred_element_type=jnp.float32)   # [32,128] f32

    x_src = proj[0:NR, 0:HC]                                # [8,64]  right @ w_lin
    a_dst_n = proj[NR:NR + NL, HC + H:HC + 2 * H]           # [8,2]   <lin(left), att_dst>
    a_edge_e = proj[NR + NL:NR + NL + E, HC:HC + H]         # [16,2]  <lin_edge(e), att_edge>
    pc_left = proj[NR:NR + NL, HC + 2 * H:HC + 2 * H + C]   # [8,32]  left @ w_pc[:C]

    # ---- one-hot gather / scatter matrices built in-kernel from edge indices ----
    src_idx = data[NR + NL:NR + NL + E, 64:65].astype(jnp.float32)   # [16,1]
    dst_idx = data[NR + NL:NR + NL + E, 65:66].astype(jnp.float32)   # [16,1]
    dst_row = data[0:1, 64:64 + E].astype(jnp.float32)               # [1,16]

    iota_r = lax.broadcasted_iota(jnp.int32, (E, NR), 1).astype(jnp.float32)
    iota_l = lax.broadcasted_iota(jnp.int32, (E, NL), 1).astype(jnp.float32)
    iota_n = lax.broadcasted_iota(jnp.int32, (NL, E), 0).astype(jnp.float32)
    s_src = jnp.where(src_idx == iota_r, 1.0, 0.0).astype(jnp.bfloat16)    # [E,NR]
    s_dst_t = jnp.where(dst_idx == iota_l, 1.0, 0.0).astype(jnp.bfloat16)  # [E,NL]
    s_dst = jnp.where(dst_row == iota_n, 1.0, 0.0).astype(jnp.bfloat16)    # [NL,E]

    # ---- gather source features + source logits to edges (one matmul) ----
    gath = jnp.dot(s_src, proj[0:NR, :].astype(jnp.bfloat16),
                   preferred_element_type=jnp.float32)       # [16,128]
    x_src_e = gath[:, 0:HC]                                  # [16,64]
    a_src_e = gath[:, HC:HC + H]                             # [16,2]

    a_dst_e = jnp.dot(s_dst_t, a_dst_n.astype(jnp.bfloat16),
                      preferred_element_type=jnp.float32)    # [16,2]

    # ---- attention logits + leaky relu ----
    alpha_raw = a_src_e + a_dst_e + a_edge_e
    alpha_lr = jnp.where(alpha_raw > 0, alpha_raw, NEG_SLOPE * alpha_raw)

    # ---- segment softmax over destination nodes (per head) ----
    # Subtracting the per-head *global* max is mathematically identical to the
    # per-segment max (it cancels in the normalisation) and avoids the per-head
    # slice/relayout loop and the extra max-gather matmul.
    m = jnp.max(alpha_lr, axis=0, keepdims=True)             # [1,2]
    exp_a = jnp.exp(alpha_lr - m)                            # [16,2] f32
    seg_sum = jnp.dot(s_dst, exp_a.astype(jnp.bfloat16),
                      preferred_element_type=jnp.float32)    # [8,2]
    recip_n = pl.reciprocal(seg_sum + 1e-16, approx=True)    # [8,2]  (EUP)
    recip_e = jnp.dot(s_dst_t, recip_n.astype(jnp.bfloat16),
                      preferred_element_type=jnp.float32)    # [16,2]
    alpha_n = exp_a * recip_e                                # [16,2] normalized attention

    # ---- messages + destination aggregation ----
    # head -> channel expansion is a pure VPU broadcast (no MXU matmul with b_exp).
    msg = jnp.concatenate(
        [alpha_n[:, h:h + 1] * x_src_e[:, h * C:(h + 1) * C] for h in range(H)],
        axis=1)                                              # [16,64]
    agg = jnp.dot(s_dst, msg.astype(jnp.bfloat16),
                  preferred_element_type=jnp.float32)        # [8,64]
    gat_out = agg + b[0:1, 0:HC]                             # + GATConv bias

    # ---- post-GAT MLP stack ----
    h1 = jnp.maximum(gat_out, 0.0)                           # relu
    h1 = jnp.dot(h1.astype(jnp.bfloat16), w2[0:HC, 0:C],
                 preferred_element_type=jnp.float32) + b[0:1, HC:HC + C]        # linear_transform
    h2 = jnp.maximum(h1, 0.0)                                # activation (ReLU)
    h2 = jnp.dot(h2.astype(jnp.bfloat16), w2[0:C, C:2 * C],
                 preferred_element_type=jnp.float32) + b[0:1, HC + C:HC + 2 * C]  # feature_module_final
    out = pc_left + jnp.dot(h2.astype(jnp.bfloat16), w2[0:C, 2 * C:3 * C],
                            preferred_element_type=jnp.float32) + b[1:2, 0:C]     # post_concat

    # ---- lane-dense [16,128] output slab: out in rows 0:8 / cols 0:32, alpha in cols 32:34 ----
    out_col = jnp.concatenate([out, jnp.zeros((E - NL, C), jnp.float32)], axis=0)   # [16,32]
    slab = jnp.concatenate(
        [out_col, alpha_n, jnp.zeros((E, LANES - C - H), jnp.float32)], axis=1)     # [16,128]
    out_ref[...] = slab


# --------------------- one-time parameter preprocessing ---------------------
def prepare_params(params):
    """Fold attention vectors into the weights and pack everything into 3 slabs."""
    w_lin = params["w_lin"]          # [C, HC]
    w_edge = params["w_edge"]        # [C, HC]

    def att_proj(w, att):            # [C,HC], [H,C] -> [C,H] : (w @ block_diag(att))
        return jnp.einsum("khc,hc->kh", w.reshape(C, H, C), att)

    w_a_src = att_proj(w_lin, params["att_src"])
    w_a_dst = att_proj(w_lin, params["att_dst"])
    w_a_edge = att_proj(w_edge, params["att_edge"])

    # w1: block-diagonal fused input projection  [2C, 128]
    #   rows 0:C  (node channels):  [ w_lin | w@att_src | w@att_dst | w_pc[:C] ]
    #   rows C:2C (edge channels):  [   0   | w_e@att_e |     0     |    0     ]
    w1 = jnp.zeros((2 * C, LANES), jnp.float32)
    w1 = w1.at[0:C, 0:HC].set(w_lin)
    w1 = w1.at[0:C, HC:HC + H].set(w_a_src)
    w1 = w1.at[0:C, HC + H:HC + 2 * H].set(w_a_dst)
    w1 = w1.at[0:C, HC + 2 * H:HC + 2 * H + C].set(params["w_pc"][:C, :])
    w1 = w1.at[C:2 * C, HC:HC + H].set(w_a_edge)

    # w2: output-side MLP weights  [HC, 128] = [ w_lt | w_fmf | w_pc[C:] ]
    w2 = jnp.zeros((HC, LANES), jnp.float32)
    w2 = w2.at[0:HC, 0:C].set(params["w_lt"])
    w2 = w2.at[0:C, C:2 * C].set(params["w_fmf"])
    w2 = w2.at[0:C, 2 * C:3 * C].set(params["w_pc"][C:, :])

    # biases (kept f32; added to f32 accumulators)
    b = jnp.zeros((8, LANES), jnp.float32)
    b = b.at[0, 0:HC].set(params["b_gat"])
    b = b.at[0, HC:HC + C].set(params["b_lt"])
    b = b.at[0, HC + C:HC + 2 * C].set(params["b_fmf"])
    b = b.at[1, 0:C].set(params["b_pc"])

    return w1.astype(jnp.bfloat16), w2.astype(jnp.bfloat16), b


# ------------------------------ forward wrapper ------------------------------
@jax.jit
def gatnet_forward(left_features, edge_index, edge_features, right_features,
                   w1, w2, biases):
    # Pack runtime inputs into one lane-dense bf16 slab (single DMA).
    #   rows 0:8   cols 0:32  = right
    #   rows 8:16  cols 0:32  = left
    #   rows 16:32 cols 32:64 = edge features
    #   rows 16:32 col 64/65  = src / dst edge indices (as floats)
    #   row 0      cols 64:80 = dst indices laid out along lanes
    src = edge_index[0].astype(jnp.float32)
    dst = edge_index[1].astype(jnp.float32)
    data = jnp.zeros((NR + NL + E, LANES), jnp.float32)
    data = data.at[0:NR, 0:C].set(right_features)
    data = data.at[NR:NR + NL, 0:C].set(left_features)
    data = data.at[NR + NL:NR + NL + E, C:2 * C].set(edge_features)
    data = data.at[NR + NL:NR + NL + E, 64].set(src)
    data = data.at[NR + NL:NR + NL + E, 65].set(dst)
    data = data.at[0, 64:64 + E].set(dst)
    data = data.astype(jnp.bfloat16)

    vmem = pl.BlockSpec(memory_space=pltpu.MemorySpace.VMEM)
    slab = pl.pallas_call(
        gat_kernel,
        out_shape=jax.ShapeDtypeStruct((E, LANES), jnp.float32),
        in_specs=[vmem, vmem, vmem, vmem],
        out_specs=vmem,
    )(data, w1, w2, biases)

    left_updated = slab[0:NL, 0:C]
    alpha = slab[0:E, C:C + H]
    # return_attention_weights=True  =>  attention_weights = (edge_index, alpha)
    return left_updated, (edge_index, alpha)


# --------------------------- pure-JAX reference ---------------------------
def gatnet_reference(left, edge_index, ef, right, params):
    src, dst = edge_index[0], edge_index[1]
    x_src = right @ params["w_lin"]
    x_dst = left @ params["w_lin"]
    e_tr = ef @ params["w_edge"]
    xs3 = x_src.reshape(NR, H, C)
    xd3 = x_dst.reshape(NL, H, C)
    e3 = e_tr.reshape(E, H, C)
    a_src_n = (xs3 * params["att_src"][None]).sum(-1)
    a_dst_n = (xd3 * params["att_dst"][None]).sum(-1)
    a_edge = (e3 * params["att_edge"][None]).sum(-1)
    alpha = a_src_n[src] + a_dst_n[dst] + a_edge
    alpha = jnp.where(alpha > 0, alpha, NEG_SLOPE * alpha)
    seg_max = jax.ops.segment_max(alpha, dst, num_segments=NL)
    exp_a = jnp.exp(alpha - seg_max[dst])
    seg_sum = jax.ops.segment_sum(exp_a, dst, num_segments=NL)
    alpha_n = exp_a / (seg_sum[dst] + 1e-16)
    msg = alpha_n[:, :, None] * xs3[src]
    agg = jax.ops.segment_sum(msg, dst, num_segments=NL).reshape(NL, HC)
    gat_out = agg + params["b_gat"][None]
    x = jnp.maximum(gat_out, 0.0)
    x = x @ params["w_lt"] + params["b_lt"]
    x = jnp.maximum(x, 0.0)
    x = x @ params["w_fmf"] + params["b_fmf"]
    out = jnp.concatenate([left, x], axis=-1) @ params["w_pc"] + params["b_pc"]
    return out, alpha_n


# ------------------------------ main ------------------------------
if __name__ == "__main__":
    key = jax.random.PRNGKey(0)
    keys = jax.random.split(key, 16)

    # deterministic parameter init (synthetic; shapes match torch module __init__)
    params = {
        "w_lin": 0.1 * jax.random.normal(keys[0], (C, HC), jnp.float32),
        "w_edge": 0.1 * jax.random.normal(keys[1], (C, HC), jnp.float32),
        "att_src": 0.1 * jax.random.normal(keys[2], (H, C), jnp.float32),
        "att_dst": 0.1 * jax.random.normal(keys[3], (H, C), jnp.float32),
        "att_edge": 0.1 * jax.random.normal(keys[4], (H, C), jnp.float32),
        "b_gat": 0.1 * jax.random.normal(keys[5], (HC,), jnp.float32),
        "w_lt": 0.1 * jax.random.normal(keys[6], (HC, C), jnp.float32),
        "b_lt": 0.1 * jax.random.normal(keys[7], (C,), jnp.float32),
        "w_fmf": 0.1 * jax.random.normal(keys[8], (C, C), jnp.float32),
        "b_fmf": 0.1 * jax.random.normal(keys[9], (C,), jnp.float32),
        "w_pc": 0.1 * jax.random.normal(keys[10], (2 * C, C), jnp.float32),
        "b_pc": 0.1 * jax.random.normal(keys[11], (C,), jnp.float32),
    }

    # deterministic inputs
    left_features = jax.random.normal(keys[12], (NL, C), jnp.float32)
    right_features = jax.random.normal(keys[13], (NR, C), jnp.float32)
    edge_features = jax.random.normal(keys[14], (E, C), jnp.float32)
    # edges: each left node gets >= 1 incoming edge
    src = jnp.arange(E, dtype=jnp.int32) % NR
    dst = (jnp.arange(E, dtype=jnp.int32) * 3) % NL
    edge_index = jnp.stack([src, dst], axis=0)            # [2, E]
    # scatter_out_size (= NL) is part of the torch input tuple but unused by forward.

    # one-time parameter packing / attention-weight folding (hoisted out of the call path)
    w1, w2, biases = prepare_params(params)
    jax.block_until_ready((w1, w2, biases))

    (left_updated, (ei_out, alpha)) = gatnet_forward(
        left_features, edge_index, edge_features, right_features, w1, w2, biases)
    jax.block_until_ready((left_updated, alpha))

    # sanity check against pure-JAX f32 reference (kernel uses bf16 MXU operands)
    ref_out, ref_alpha = gatnet_reference(
        left_features, edge_index, edge_features, right_features, params)
    assert left_updated.shape == (NL, C) and alpha.shape == (E, H)
    assert jnp.allclose(left_updated, ref_out, rtol=3e-2, atol=3e-2)
    assert jnp.allclose(alpha, ref_alpha, rtol=3e-2, atol=3e-2)

    # TODO(synk): for multi-graph workloads, add a leading "parallel" grid axis so both
    # v7x TensorCores are used; a single tiny graph necessarily runs on one TC.
    print("KERNEL_OK")
</pallas_src>

<mosaic_0001>
module attributes {stable_mosaic.version = 11 : i64} {
  func.func @gat_kernel(%arg0: memref<32x128xbf16, #tpu.memory_space<vmem>>, %arg1: memref<64x128xbf16, #tpu.memory_space<vmem>>, %arg2: memref<64x128xbf16, #tpu.memory_space<vmem>>, %arg3: memref<8x128xf32, #tpu.memory_space<vmem>>, %arg4: memref<16x128xf32, #tpu.memory_space<vmem>>) attributes {dimension_semantics = [], scalar_prefetch = 0 : i64, scratch_operands = 0 : i64, tpu.core_type = #tpu.core_type<tc>} {
    %c0 = arith.constant 0 : index
    %c0_0 = arith.constant 0 : index
    %0 = vector.load %arg0[%c0, %c0_0] : memref<32x128xbf16, #tpu.memory_space<vmem>>, vector<32x128xbf16>
    %c0_1 = arith.constant 0 : index
    %c0_2 = arith.constant 0 : index
    %1 = vector.load %arg1[%c0_1, %c0_2] : memref<64x128xbf16, #tpu.memory_space<vmem>>, vector<64x128xbf16>
    %c0_3 = arith.constant 0 : index
    %c0_4 = arith.constant 0 : index
    %2 = vector.load %arg2[%c0_3, %c0_4] : memref<64x128xbf16, #tpu.memory_space<vmem>>, vector<64x128xbf16>
    %c0_5 = arith.constant 0 : index
    %c0_6 = arith.constant 0 : index
    %3 = vector.load %arg3[%c0_5, %c0_6] : memref<8x128xf32, #tpu.memory_space<vmem>>, vector<8x128xf32>
    %4 = vector.extract_strided_slice %0 {offsets = [0, 0], sizes = [32, 64], strides = [1, 1]} : vector<32x128xbf16> to vector<32x64xbf16>
    %cst = arith.constant dense<0.000000e+00> : vector<32x128xf32>
    %5 = tpu.matmul %4, %1, %cst {dimension_numbers = #tpu.dot_dimension_numbers<[1], [0], [0], [1], [0, 0, 1, 1], [], []>} : vector<32x64xbf16>, vector<64x128xbf16>, vector<32x128xf32> -> vector<32x128xf32>
    %6 = vector.extract_strided_slice %5 {offsets = [8, 66], sizes = [8, 2], strides = [1, 1]} : vector<32x128xf32> to vector<8x2xf32>
    %7 = vector.extract_strided_slice %5 {offsets = [16, 64], sizes = [16, 2], strides = [1, 1]} : vector<32x128xf32> to vector<16x2xf32>
    %8 = vector.extract_strided_slice %5 {offsets = [8, 68], sizes = [8, 32], strides = [1, 1]} : vector<32x128xf32> to vector<8x32xf32>
    %9 = vector.extract_strided_slice %0 {offsets = [16, 64], sizes = [16, 1], strides = [1, 1]} : vector<32x128xbf16> to vector<16x1xbf16>
    %10 = arith.extf %9 : vector<16x1xbf16> to vector<16x1xf32>
    %11 = vector.extract_strided_slice %0 {offsets = [16, 65], sizes = [16, 1], strides = [1, 1]} : vector<32x128xbf16> to vector<16x1xbf16>
    %12 = arith.extf %11 : vector<16x1xbf16> to vector<16x1xf32>
    %13 = vector.extract_strided_slice %0 {offsets = [0, 64], sizes = [1, 16], strides = [1, 1]} : vector<32x128xbf16> to vector<1x16xbf16>
    %14 = arith.extf %13 : vector<1x16xbf16> to vector<1x16xf32>
    %15 = tpu.iota {dimensions = array<i32: 1>} : vector<16x8xi32>
    %16 = arith.sitofp %15 : vector<16x8xi32> to vector<16x8xf32>
    %17 = tpu.iota {dimensions = array<i32: 1>} : vector<16x8xi32>
    %18 = arith.sitofp %17 : vector<16x8xi32> to vector<16x8xf32>
    %19 = tpu.iota {dimensions = array<i32: 0>} : vector<8x16xi32>
    %20 = arith.sitofp %19 : vector<8x16xi32> to vector<8x16xf32>
    %21 = vector.broadcast %10 : vector<16x1xf32> to vector<16x8xf32>
    %22 = arith.cmpf oeq, %21, %16 : vector<16x8xf32>
    %cst_7 = arith.constant 1.000000e+00 : f32
    %cst_8 = arith.constant 0.000000e+00 : f32
    %23 = vector.broadcast %cst_7 : f32 to vector<16x8xf32>
    %24 = vector.broadcast %cst_8 : f32 to vector<16x8xf32>
    %25 = arith.select %22, %23, %24 : vector<16x8xi1>, vector<16x8xf32>
    %26 = arith.truncf %25 : vector<16x8xf32> to vector<16x8xbf16>
    %27 = vector.broadcast %12 : vector<16x1xf32> to vector<16x8xf32>
    %28 = arith.cmpf oeq, %27, %18 : vector<16x8xf32>
    %cst_9 = arith.constant 1.000000e+00 : f32
    %cst_10 = arith.constant 0.000000e+00 : f32
    %29 = vector.broadcast %cst_9 : f32 to vector<16x8xf32>
    %30 = vector.broadcast %cst_10 : f32 to vector<16x8xf32>
    %31 = arith.select %28, %29, %30 : vector<16x8xi1>, vector<16x8xf32>
    %32 = arith.truncf %31 : vector<16x8xf32> to vector<16x8xbf16>
    %33 = vector.broadcast %14 : vector<1x16xf32> to vector<8x16xf32>
    %34 = arith.cmpf oeq, %33, %20 : vector<8x16xf32>
    %cst_11 = arith.constant 1.000000e+00 : f32
    %cst_12 = arith.constant 0.000000e+00 : f32
    %35 = vector.broadcast %cst_11 : f32 to vector<8x16xf32>
    %36 = vector.broadcast %cst_12 : f32 to vector<8x16xf32>
    %37 = arith.select %34, %35, %36 : vector<8x16xi1>, vector<8x16xf32>
    %38 = arith.truncf %37 : vector<8x16xf32> to vector<8x16xbf16>
    %39 = vector.extract_strided_slice %5 {offsets = [0, 0], sizes = [8, 128], strides = [1, 1]} : vector<32x128xf32> to vector<8x128xf32>
    %40 = arith.truncf %39 : vector<8x128xf32> to vector<8x128xbf16>
    %cst_13 = arith.constant dense<0.000000e+00> : vector<16x128xf32>
    %41 = tpu.matmul %26, %40, %cst_13 {dimension_numbers = #tpu.dot_dimension_numbers<[1], [0], [0], [1], [0, 0, 1, 1], [], []>} : vector<16x8xbf16>, vector<8x128xbf16>, vector<16x128xf32> -> vector<16x128xf32>
    %42 = vector.extract_strided_slice %41 {offsets = [0, 0], sizes = [16, 64], strides = [1, 1]} : vector<16x128xf32> to vector<16x64xf32>
    %43 = vector.extract_strided_slice %41 {offsets = [0, 64], sizes = [16, 2], strides = [1, 1]} : vector<16x128xf32> to vector<16x2xf32>
    %44 = arith.truncf %6 : vector<8x2xf32> to vector<8x2xbf16>
    %cst_14 = arith.constant dense<0.000000e+00> : vector<16x2xf32>
    %45 = tpu.matmul %32, %44, %cst_14 {dimension_numbers = #tpu.dot_dimension_numbers<[1], [0], [0], [1], [0, 0, 1, 1], [], []>} : vector<16x8xbf16>, vector<8x2xbf16>, vector<16x2xf32> -> vector<16x2xf32>
    %46 = arith.addf %43, %45 : vector<16x2xf32>
    %47 = arith.addf %46, %7 : vector<16x2xf32>
    %cst_15 = arith.constant 0.000000e+00 : f32
    %48 = vector.broadcast %cst_15 : f32 to vector<16x2xf32>
    %49 = arith.cmpf ogt, %47, %48 : vector<16x2xf32>
    %cst_16 = arith.constant 2.000000e-01 : f32
    %50 = vector.broadcast %cst_16 : f32 to vector<16x2xf32>
    %51 = arith.mulf %50, %47 : vector<16x2xf32>
    %52 = arith.select %49, %47, %51 : vector<16x2xi1>, vector<16x2xf32>
    %cst_17 = arith.constant dense<0xFF800000> : vector<2xf32>
    %53 = vector.multi_reduction <maximumf>, %52, %cst_17 [0] : vector<16x2xf32> to vector<2xf32>
    %54 = vector.shape_cast %53 : vector<2xf32> to vector<1x2xf32>
    %55 = vector.broadcast %54 : vector<1x2xf32> to vector<16x2xf32>
    %56 = arith.subf %52, %55 : vector<16x2xf32>
    %57 = math.exp %56 : vector<16x2xf32>
    %58 = arith.truncf %57 : vector<16x2xf32> to vector<16x2xbf16>
    %cst_18 = arith.constant dense<0.000000e+00> : vector<8x2xf32>
    %59 = tpu.matmul %38, %58, %cst_18 {dimension_numbers = #tpu.dot_dimension_numbers<[1], [0], [0], [1], [0, 0, 1, 1], [], []>} : vector<8x16xbf16>, vector<16x2xbf16>, vector<8x2xf32> -> vector<8x2xf32>
    %cst_19 = arith.constant 1.000000e-16 : f32
    %60 = vector.broadcast %cst_19 : f32 to vector<8x2xf32>
    %61 = arith.addf %59, %60 : vector<8x2xf32>
    %62 = tpu.reciprocal %61 {approx = true} : vector<8x2xf32> -> vector<8x2xf32>
    %63 = arith.truncf %62 : vector<8x2xf32> to vector<8x2xbf16>
    %cst_20 = arith.constant dense<0.000000e+00> : vector<16x2xf32>
    %64 = tpu.matmul %32, %63, %cst_20 {dimension_numbers = #tpu.dot_dimension_numbers<[1], [0], [0], [1], [0, 0, 1, 1], [], []>} : vector<16x8xbf16>, vector<8x2xbf16>, vector<16x2xf32> -> vector<16x2xf32>
    %65 = arith.mulf %57, %64 : vector<16x2xf32>
    %66 = vector.extract_strided_slice %65 {offsets = [0, 0], sizes = [16, 1], strides = [1, 1]} : vector<16x2xf32> to vector<16x1xf32>
    %67 = vector.extract_strided_slice %42 {offsets = [0, 0], sizes = [16, 32], strides = [1, 1]} : vector<16x64xf32> to vector<16x32xf32>
    %68 = vector.broadcast %66 : vector<16x1xf32> to vector<16x32xf32>
    %69 = arith.mulf %68, %67 : vector<16x32xf32>
    %70 = vector.extract_strided_slice %65 {offsets = [0, 1], sizes = [16, 1], strides = [1, 1]} : vector<16x2xf32> to vector<16x1xf32>
    %71 = vector.extract_strided_slice %42 {offsets = [0, 32], sizes = [16, 32], strides = [1, 1]} : vector<16x64xf32> to vector<16x32xf32>
    %72 = vector.broadcast %70 : vector<16x1xf32> to vector<16x32xf32>
    %73 = arith.mulf %72, %71 : vector<16x32xf32>
    %74 = tpu.concatenate %69, %73 in 1 : vector<16x32xf32>, vector<16x32xf32> -> vector<16x64xf32>
    %75 = arith.truncf %74 : vector<16x64xf32> to vector<16x64xbf16>
    %cst_21 = arith.constant dense<0.000000e+00> : vector<8x64xf32>
    %76 = tpu.matmul %38, %75, %cst_21 {dimension_numbers = #tpu.dot_dimension_numbers<[1], [0], [0], [1], [0, 0, 1, 1], [], []>} : vector<8x16xbf16>, vector<16x64xbf16>, vector<8x64xf32> -> vector<8x64xf32>
    %77 = vector.extract_strided_slice %3 {offsets = [0, 0], sizes = [1, 64], strides = [1, 1]} : vector<8x128xf32> to vector<1x64xf32>
    %78 = vector.broadcast %77 : vector<1x64xf32> to vector<8x64xf32>
    %79 = arith.addf %76, %78 : vector<8x64xf32>
    %cst_22 = arith.constant 0.000000e+00 : f32
    %80 = vector.broadcast %cst_22 : f32 to vector<8x64xf32>
    %81 = arith.maximumf %79, %80 : vector<8x64xf32>
    %82 = arith.truncf %81 : vector<8x64xf32> to vector<8x64xbf16>
    %83 = vector.extract_strided_slice %2 {offsets = [0, 0], sizes = [64, 32], strides = [1, 1]} : vector<64x128xbf16> to vector<64x32xbf16>
    %cst_23 = arith.constant dense<0.000000e+00> : vector<8x32xf32>
    %84 = tpu.matmul %82, %83, %cst_23 {dimension_numbers = #tpu.dot_dimension_numbers<[1], [0], [0], [1], [0, 0, 1, 1], [], []>} : vector<8x64xbf16>, vector<64x32xbf16>, vector<8x32xf32> -> vector<8x32xf32>
    %85 = vector.extract_strided_slice %3 {offsets = [0, 64], sizes = [1, 32], strides = [1, 1]} : vector<8x128xf32> to vector<1x32xf32>
    %86 = vector.broadcast %85 : vector<1x32xf32> to vector<8x32xf32>
    %87 = arith.addf %84, %86 : vector<8x32xf32>
    %cst_24 = arith.constant 0.000000e+00 : f32
    %88 = vector.broadcast %cst_24 : f32 to vector<8x32xf32>
    %89 = arith.maximumf %87, %88 : vector<8x32xf32>
    %90 = arith.truncf %89 : vector<8x32xf32> to vector<8x32xbf16>
    %91 = vector.extract_strided_slice %2 {offsets = [0, 32], sizes = [32, 32], strides = [1, 1]} : vector<64x128xbf16> to vector<32x32xbf16>
    %cst_25 = arith.constant dense<0.000000e+00> : vector<8x32xf32>
    %92 = tpu.matmul %90, %91, %cst_25 {dimension_numbers = #tpu.dot_dimension_numbers<[1], [0], [0], [1], [0, 0, 1, 1], [], []>} : vector<8x32xbf16>, vector<32x32xbf16>, vector<8x32xf32> -> vector<8x32xf32>
    %93 = vector.extract_strided_slice %3 {offsets = [0, 96], sizes = [1, 32], strides = [1, 1]} : vector<8x128xf32> to vector<1x32xf32>
    %94 = vector.broadcast %93 : vector<1x32xf32> to vector<8x32xf32>
    %95 = arith.addf %92, %94 : vector<8x32xf32>
    %96 = arith.truncf %95 : vector<8x32xf32> to vector<8x32xbf16>
    %97 = vector.extract_strided_slice %2 {offsets = [0, 64], sizes = [32, 32], strides = [1, 1]} : vector<64x128xbf16> to vector<32x32xbf16>
    %cst_26 = arith.constant dense<0.000000e+00> : vector<8x32xf32>
    %98 = tpu.matmul %96, %97, %cst_26 {dimension_numbers = #tpu.dot_dimension_numbers<[1], [0], [0], [1], [0, 0, 1, 1], [], []>} : vector<8x32xbf16>, vector<32x32xbf16>, vector<8x32xf32> -> vector<8x32xf32>
    %99 = arith.addf %8, %98 : vector<8x32xf32>
    %100 = vector.extract_strided_slice %3 {offsets = [1, 0], sizes = [1, 32], strides = [1, 1]} : vector<8x128xf32> to vector<1x32xf32>
    %101 = vector.broadcast %100 : vector<1x32xf32> to vector<8x32xf32>
    %102 = arith.addf %99, %101 : vector<8x32xf32>
    %cst_27 = arith.constant 0.000000e+00 : f32
    %103 = vector.broadcast %cst_27 : f32 to vector<8x32xf32>
    %104 = tpu.concatenate %102, %103 in 0 : vector<8x32xf32>, vector<8x32xf32> -> vector<16x32xf32>
    %cst_28 = arith.constant 0.000000e+00 : f32
    %105 = vector.broadcast %cst_28 : f32 to vector<16x94xf32>
    %106 = tpu.concatenate %104, %65, %105 in 1 : vector<16x32xf32>, vector<16x2xf32>, vector<16x94xf32> -> vector<16x128xf32>
    %c0_29 = arith.constant 0 : index
    %c0_30 = arith.constant 0 : index
    %107 = vector.load %arg4[%c0_29, %c0_30] : memref<16x128xf32, #tpu.memory_space<vmem>>, vector<16x128xf32>
    tpu.vector_store %arg4[%c0_29, %c0_30], %106 {strides = array<i32>} : memref<16x128xf32, #tpu.memory_space<vmem>>, vector<16x128xf32>,
    return
  }
}

</mosaic_0001>

<bundles_post_ra>
// kernel: gatnet_forward.1
= control target key start
LH: loop header
LB: loop body
LE: loop exit
PB: predicated region body
PF: predicated region fallthrough
CT: control target
= control target key end

     0   :  { %vm73_vm0 = vcmask 523264   ;;  %v538_v9 = vmov 65   ;;  %v539_v10 = vmov 64   ;;  %vm145_vm1 = vcmask 1043456   ;;  %s542_s29 = smov 64   ;;  %s543_s7 = smov 32   ;;  %s683_s1 = inlined_call_operand.vmem [shape: bf16[64,128], index: 1, kind: input, shape index: {}]   ;;  %s684_s0 = inlined_call_operand.vmem [shape: bf16[32,128], index: 0, kind: input, shape index: {}]   ;;  %s685_s3 = inlined_call_operand.vmem [shape: f32[8,128], index: 3, kind: input, shape index: {}]   ;;  %s686_s2 = inlined_call_operand.vmem [shape: bf16[64,128], index: 2, kind: input, shape index: {}]   ;;  %s687_s4 = inlined_call_operand.vmem [shape: f32[16,128], index: 4, kind: output, shape index: {}]  }
   0x1   :  { %v502_v0 = vld [vmem:[%s683_s1 + $0x18] sm:$0xff]  ;;  %v501_v1 = vld [vmem:[%s683_s1 + $0x10] sm:$0xff]  ;;  %v500_v2 = vld [vmem:[%s683_s1 + $0x8] sm:$0xff]  ;;  %516 = vset.pattern.permute.xlu0 %v538_v9  ;;  %529 = vset.pattern.permute.xlu2 %v538_v9  ;;  %v102_v16 = vlaneseq  ;;  %v541_v23 = vmov 0.0   ;;  %vm141_vm4 = vcmask 64512   ;;  %vm205_vm9 = vcmask 540160  }
   0x2   :  { %84 = vmatpush.bf16.msra.mxu0 %v502_v0  ;;  %v499_v3 = vld [vmem:[%s683_s1] sm:$0xff]  ;;  %v20_v5 = vld [vmem:[%s684_s0 + $0x8] sm:$0xff]   ;;  %522 = vset.pattern.permute.xlu1 %v539_v10  ;;  %s540_s1 = smov 62   ;;  %vm229_vm11 = vcmask 130048   ;;  %s544_s8 = smov 68   ;;  %vm297_vm12 = vcmask 261120  }
   0x3   :  { %v497_v4 = vld [vmem:[%s684_s0] sm:$0xff]  ;;  %v99_v6 = vunpack.c.l.bf16 %v20_v5  ;;  %v100_v7 = vunpack.c.h.bf16 %v20_v5  ;;  %v103_v17 = vand.u32 127, %v102_v16  ;;  %v498_v19 = vld [vmem:[%s684_s0 + $0x8] sm:$0xff]  ;;  %v106_v39 = vshrl.u32 %v102_v16, 7  ;;  %s545_s9 = smov 96  }
   0x4   :  { %v18_v37 = vld [vmem:[%s684_s0] sm:$0xf]  ;;  %vm438_vm13 = vcmask 277504  }
   0x5   :  { %v517_v8 = vpack.i.bf16 %v100_v7, %v99_v6  ;;  %v104_v20 = vcvt.s32.f32 %v103_v17  ;;  %v101_v38 = vunpack.c.l.bf16 %v18_v37  ;;  %v107_v40 = vcvt.s32.f32 %v106_v39 }
   0x6   :  { %85 = vmatpush.bf16.msra.mxu0 %v501_v1 }
   0x7   :  { %518 = vperm.xlu0 %516, %v517_v8   ;;  %524 = vperm.xlu1 %522, %v517_v8   ;;  %v136_v41 = vperm.slane %v101_v38, 0  ;;  %v505_v38 = vld [vmem:[%s686_s2 + $0x10] sm:$0xff] }
   0x9   :  { %vm137_vm7 = vcmp.eq.f32.partialorder %v136_v41, %v107_v40 }
   0xa   :  { %86 = vmatpush.bf16.msra.mxu0 %v500_v2  ;;  %v138_v43 = vsel %vm137_vm7, 1.0, %v541_v23 }
   0xb   :  { %v139_v44 = vpack.c.bf16 %v138_v43, %v138_v43  ;;  %v504_v43 = vld [vmem:[%s686_s2 + $0x8] sm:$0xff] }
   0xe   :  { %87 = vmatpush.bf16.msra.mxu0 %v499_v3 }
   0xf   :  { %528 = vset.pattern.permute.xlu0 %v539_v10 }
  0x11   :  { %471 = vmatmul.msk.bf16.vlgmr.msra.gmra.mxu0 %vm73_vm0, %v497_v4 }
  0x21   :  { %472 = vmatmul.msk.bf16.gmra.mxu0 %vm73_vm0, %v498_v19 }
  0x79   :  { %v525_v18 = vpop.permute.xlu1 %524  ;;  %v519_v27 = vpop.permute.xlu0 %518 }
  0x7a   :  { %v527_v21 = vunpack.i.h.bf16 %v525_v18  ;;  %v526_v22 = vunpack.i.l.bf16 %v525_v18  ;;  %v521_v28 = vunpack.i.h.bf16 %v519_v27  ;;  %v520_v29 = vunpack.i.l.bf16 %v519_v27  ;;  %v38_v27 = vld [vmem:[%s685_s3] sm:$0xff] }
  0x7c   :  { %vm119_vm2 = vcmp.eq.f32.partialorder %v527_v21, %v104_v20  ;;  %vm118_vm3 = vcmp.eq.f32.partialorder %v526_v22, %v104_v20  ;;  %vm132_vm5 = vcmp.eq.f32.partialorder %v521_v28, %v104_v20  ;;  %vm131_vm6 = vcmp.eq.f32.partialorder %v520_v29, %v104_v20 }
  0x7d   :  { %v121_v24 = vsel %vm119_vm2, 1.0, %v541_v23  ;;  %v120_v25 = vsel %vm118_vm3, 1.0, %v541_v23  ;;  %v134_v30 = vsel %vm132_vm5, 1.0, %v541_v23  ;;  %v133_v31 = vsel %vm131_vm6, 1.0, %v541_v23 }
  0x7e   :  { %v122_v26 = vpack.c.bf16 %v121_v24, %v120_v25  ;;  %v608_v34 = vpack.c.bf16 %v134_v30, %v133_v31  ;;  %v301_v28 = vperm.slane %v38_v27, 0  ;;  %v416_v29 = vperm.slane %v38_v27, 1 }
  0x8e   :  { %v89_v11 = vpop.f32.mrf.mxu0 }
  0x8f   :  { %v140_v12 = vpack.c.bf16 %v89_v11, %v89_v11 }
  0x91   :  { %v147_v13 = vsel %vm145_vm1, %v140_v12, 0 }
  0x92   :  { %156 = vmatpush.bf16.msra.mxu1 %v147_v13 }
  0x95   :  { %473 = vmatmul.msk.bf16.vlgmr.msra.gmra.mxu1 %vm141_vm4, %v122_v26 }
  0x96   :  { %v594_v14 = vpop.f32.mrf.mxu0 }
  0x97   :  { %v163_v15 = vpack.c.bf16 %v594_v14, %v594_v14 }
  0x99   :  { %165 = vrot.lane.b32.xlu0 %v163_v15, %s540_s1 }
  0x9e   :  { %v94_v45 = vpop.f32.mrf.mxu0 }
  0xa1   :  { %223 = vrot.lane.b32.xlu0 %v139_v44, %s542_s29 }
  0xa6   :  { %v96_v49 = vpop.f32.mrf.mxu0 }
 0x10b   :  { %v166_v32 = vpop.permute.xlu0 %165 }
 0x10c   :  { %v171_v33 = vsel %vm145_vm1, %v166_v32, 0 }
 0x10d   :  { %180 = vmatpush.bf16.msra.mxu2 %v171_v33 }
 0x110   :  { %474 = vmatmul.msk.bf16.vlgmr.msra.gmra.mxu2 %vm141_vm4, %v608_v34 }
 0x112   :  { %v617_v42 = vpop.f32.mrf.mxu1 }
 0x113   :  { %v224_v12 = vpop.permute.xlu0 %223 }
 0x11a   :  { %v621_v46 = vpop.f32.mrf.mxu1 }
 0x193   :  { %v182_v35 = vpop.f32.mrf.mxu2 }
 0x194   :  { %189 = vrot.lane.b32.xlu1 %v182_v35, %s542_s29 }
 0x19b   :  { %v184_v36 = vpop.f32.mrf.mxu2 }
 0x19c   :  { %191 = vrot.lane.b32.xlu2 %v184_v36, %s542_s29 }
 0x1f6   :  { %v192_v47 = vpop.permute.xlu2 %191 }
 0x1f7   :  { %v196_v48 = vadd.f32 %v192_v47, %v621_v46 }
 0x1f9   :  { %v198_v50 = vadd.f32 %v196_v48, %v96_v49 }
 0x1fb   :  { %v202_v52 = vmul.f32 0.2, %v198_v50  ;;  %vm200_vm8 = vcmp.gt.f32.partialorder %v198_v50, 0.0 }
 0x1fd   :  { %v204_v55 = vsel %vm200_vm8, %v198_v50, %v202_v52 }
 0x1fe   :  { %v207_v58 = vsel %vm205_vm9, %v204_v55, -inf }
 0x206   :  { %v190_v51 = vpop.permute.xlu1 %189 }
 0x207   :  { %v195_v53 = vadd.f32 %v190_v51, %v617_v42 }
 0x209   :  { %v197_v54 = vadd.f32 %v195_v53, %v94_v45 }
 0x20b   :  { %vm199_vm10 = vcmp.gt.f32.partialorder %v197_v54, 0.0  ;;  %v201_v56 = vmul.f32 0.2, %v197_v54 }
 0x20d   :  { %v203_v57 = vsel %vm199_vm10, %v197_v54, %v201_v56 }
 0x20e   :  { %v206_v59 = vsel %vm205_vm9, %v203_v57, -inf }
 0x20f   :  { %v208_v60 = vmax.f32 %v206_v59, %v207_v58 }
 0x211   :  { %v209_v61 = vrot.slane %v208_v60, 4 }
 0x213   :  { %v210_v62 = vmax.f32 %v208_v60, %v209_v61 }
 0x215   :  { %v211_v63 = vrot.slane %v210_v62, 2 }
 0x217   :  { %v212_v0 = vmax.f32 %v210_v62, %v211_v63 }
 0x219   :  { %v213_v1 = vrot.slane %v212_v0, 1 }
 0x21b   :  { %v214_v2 = vmax.f32 %v212_v0, %v213_v1 }
 0x21d   :  { %v215_v3 = vsub.f32 %v203_v57, %v214_v2  ;;  %v216_v4 = vsub.f32 %v204_v55, %v214_v2 }
 0x21f   :  { %v217_v5 = vmul.f32 1.442695, %v215_v3  ;;  %v219_v6 = vmul.f32 1.442695, %v216_v4 }
 0x221   :  { %532 = vpow2.f32 %v217_v5 }
 0x222   :  { %534 = vpow2.f32 %v219_v6 }
 0x227   :  { %v533_v7 = vpop.eup %532 }
 0x228   :  { %v535_v8 = vpop.eup %534 }
 0x229   :  { %v221_v10 = vpack.c.bf16 %v535_v8, %v533_v7 }
 0x22b   :  { %226 = vrot.lane.b32.xlu2 %v221_v10, %s542_s29 }
 0x285   :  { %v227_v11 = vpop.permute.xlu2 %226 }
 0x286   :  { %240 = vmatpush.bf16.msra.mxu3 %v227_v11 }
 0x289   :  { %475 = vmatmul.msk.bf16.vlgmr.msra.gmra.mxu3 %vm229_vm11, %v224_v12 }
 0x30c   :  { %v242_v13 = vpop.f32.mrf.mxu3 }
 0x30d   :  { %v243_v15 = vadd.f32 1e-16, %v242_v13 }
 0x30f   :  { %536 = vrcp.f32 %v243_v15 }
 0x314   :  { %v244_v16 = vpop.f32.mrf.mxu3 }
 0x315   :  { %v537_v17 = vpop.eup %536 }
 0x316   :  { %v247_v18 = vpack.c.bf16 %v537_v17, %v537_v17 }
 0x318   :  { %v249_v19 = vsel %vm145_vm1, %v247_v18, 0 }
 0x319   :  { %258 = vmatpush.bf16.msrb.mxu1 %v249_v19 }
 0x31c   :  { %476 = vmatmul.msk.bf16.vlgmr.msrb.gmra.mxu1 %vm141_vm4, %v608_v34 }
 0x399   :  { %v260_v20 = vpop.f32.mrf.mxu1 }
 0x39a   :  { %267 = vrot.lane.b32.xlu1 %v260_v20, %s542_s29 }
 0x3a1   :  { %v262_v21 = vpop.f32.mrf.mxu1 }
 0x3a2   :  { %269 = vrot.lane.b32.xlu2 %v262_v21, %s542_s29 }
 0x3fc   :  { %v270_v22 = vpop.permute.xlu2 %269 }
 0x3fd   :  { %v632_v24 = vmul.f32 %v535_v8, %v270_v22 }
 0x3ff   :  { %282 = vperm.xlu1 %522, %v632_v24  }
 0x407   :  { %530 = vset.pattern.permute.xlu1 %v538_v9 }
 0x408   :  { %292 = vperm.xlu1 %530, %v632_v24  }
 0x40c   :  { %v268_v25 = vpop.permute.xlu1 %267 }
 0x40d   :  { %v273_v26 = vmul.f32 %v533_v7, %v268_v25 }
 0x40f   :  { %277 = vperm.xlu0 %528, %v273_v26   ;;  %288 = vperm.xlu2 %529, %v273_v26  }
 0x417   :  { %342 = vrot.lane.b32.xlu0 %v301_v28, %s542_s29  ;;  %365 = vrot.lane.b32.xlu2 %v504_v43, %s545_s9 }
 0x418   :  { %531 = vset.pattern.permute.xlu0 %v538_v9  ;;  %v506_v9 = vld [vmem:[%s686_s2 + $0x18] sm:$0xff] }
 0x419   :  { %352 = vmatpush.bf16.msrb.mxu3 %v506_v9 }
 0x41d   :  { %353 = vmatpush.bf16.msrb.mxu3 %v505_v38 }
 0x41f   :  { %369 = vrot.lane.b32.xlu0 %v301_v28, %s543_s7  ;;  %391 = vrot.lane.b32.xlu2 %v504_v43, %s542_s29 }
 0x421   :  { %354 = vmatpush.bf16.msrb.mxu3 %v504_v43 }
 0x427   :  { %418 = vrot.lane.b32.xlu0 %v416_v29, %s544_s8 }
 0x42f   :  { %430 = vrot.lane.b32.xlu0 %v273_v26, %s545_s9 }
 0x469   :  { %v289_v32 = vpop.permute.xlu2 %288 }
 0x46a   :  { %v295_v35 = vmul.f32 %v289_v32, %v617_v42 }
 0x471   :  { %v283_v30 = vpop.permute.xlu1 %282  ;;  %v366_v49 = vpop.permute.xlu2 %365 }
 0x472   :  { %v286_v36 = vmul.f32 %v283_v30, %v621_v46  ;;  %381 = vmatpush.bf16.msra.mxu1 %v366_v49 }
 0x479   :  { %v392_v51 = vpop.permute.xlu2 %391 }
 0x47a   :  { %v293_v31 = vpop.permute.xlu1 %292 }
 0x47b   :  { %v296_v33 = vmul.f32 %v293_v31, %v621_v46 }
 0x47d   :  { %v299_v40 = vsel %vm297_vm12, %v286_v36, %v296_v33 }
 0x481   :  { %v278_v34 = vpop.permute.xlu0 %277 }
 0x482   :  { %v285_v37 = vmul.f32 %v278_v34, %v617_v42  ;;  %v503_v42 = vld [vmem:[%s686_s2] sm:$0xff]  ;;  %s546_s2 = smov 60  }
 0x483   :  { %355 = vmatpush.bf16.msrb.mxu3 %v503_v42  ;;  %363 = vrot.lane.b32.xlu1 %v503_v42, %s545_s9 }
 0x484   :  { %v298_v39 = vsel %vm297_vm12, %v285_v37, %v295_v35 }
 0x485   :  { %v300_v41 = vpack.c.bf16 %v299_v40, %v298_v39 }
 0x487   :  { %309 = vmatpush.bf16.msrb.mxu2 %v300_v41 }
 0x489   :  { %v343_v52 = vpop.permute.xlu0 %342 }
 0x48a   :  { %477 = vmatmul.msk.bf16.vlgmr.msrb.gmra.mxu2 %vm229_vm11, %v224_v12 }
 0x48b   :  { %389 = vrot.lane.b32.xlu1 %v503_v42, %s542_s29  ;;  %404 = vmatpush.bf16.msra.mxu2 %v392_v51 }
 0x491   :  { %v370_v59 = vpop.permute.xlu0 %369 }
 0x499   :  { %v419_v4 = vpop.permute.xlu0 %418 }
 0x4a1   :  { %v431_v6 = vpop.permute.xlu0 %430 }
 0x4f5   :  { %v364_v50 = vpop.permute.xlu1 %363 }
 0x4f6   :  { %382 = vmatpush.bf16.msra.mxu1 %v364_v50 }
 0x4fd   :  { %v390_v58 = vpop.permute.xlu1 %389 }
 0x4fe   :  { %405 = vmatpush.bf16.msra.mxu2 %v390_v58 }
 0x50d   :  { %v311_v44 = vpop.f32.mrf.mxu2 }
 0x50e   :  { %v312_v45 = vadd.f32 %v311_v44, %v301_v28 }
 0x510   :  { %v315_v46 = vmax.f32 %v312_v45, 0.0 }
 0x512   :  { %v316_v47 = vpack.c.bf16 %v315_v46, %v315_v46 }
 0x514   :  { %494 = vmatmul.msk.bf16.vlgmr.msrb.gmra.mxu3 %vm73_vm0, %v316_v47 }
 0x515   :  { %v313_v48 = vpop.f32.mrf.mxu2 }
 0x597   :  { %v357_v53 = vpop.f32.mrf.mxu3 }
 0x598   :  { %v358_v54 = vadd.f32 %v357_v53, %v343_v52 }
 0x59a   :  { %v361_v55 = vmax.f32 %v358_v54, 0.0 }
 0x59c   :  { %v362_v56 = vpack.c.bf16 %v361_v55, %v361_v55 }
 0x59e   :  { %495 = vmatmul.msk.bf16.vlgmr.msra.gmra.mxu1 %vm297_vm12, %v362_v56 }
 0x59f   :  { %v359_v57 = vpop.f32.mrf.mxu3 }
 0x61b   :  { %v384_v60 = vpop.f32.mrf.mxu1 }
 0x61c   :  { %v385_v61 = vadd.f32 %v384_v60, %v370_v59 }
 0x61e   :  { %v388_v62 = vpack.c.bf16 %v385_v61, %v385_v61 }
 0x620   :  { %496 = vmatmul.msk.bf16.vlgmr.msra.gmra.mxu2 %vm297_vm12, %v388_v62 }
 0x623   :  { %v386_v63 = vpop.f32.mrf.mxu1 }
 0x6a3   :  { %v407_v0 = vpop.f32.mrf.mxu2 }
 0x6a4   :  { %412 = vrot.lane.b32.xlu2 %v407_v0, %s544_s8 }
 0x6ab   :  { %v409_v1 = vpop.f32.mrf.mxu2 }
 0x6ac   :  { %426 = vrot.lane.b32.xlu2 %v541_v23, %s546_s2 }
 0x6fe   :  { %v413_v2 = vpop.permute.xlu2 %412 }
 0x6ff   :  { %v415_v3 = vadd.f32 %v413_v2, %v594_v14 }
 0x701   :  { %v421_v5 = vadd.f32 %v419_v4, %v415_v3 }
 0x703   :  { %424 = vrot.lane.b32.xlu1 %v421_v5, %s546_s2 }
 0x706   :  { %v427_v23 = vpop.permute.xlu2 %426 }
 0x70b   :  { %432 = vrot.lane.b32.xlu1 %v632_v24, %s545_s9 }
 0x775   :  { %v425_v7 = vpop.permute.xlu1 %424 }
 0x776   :  { %v436_v8 = vsel %vm297_vm12, %v425_v7, %v431_v6 }
 0x777   :  { %v439_v10 = vsel %vm438_vm13, %v436_v8, 0.0 }
 0x778   :  { %441 = vst [vmem:[%s687_s4] sm:$0xff] %v439_v10 }
 0x77d   :  { %v433_v11 = vpop.permute.xlu1 %432 }
 0x77e   :  { %v437_v14 = vsel %vm297_vm12, %v427_v23, %v433_v11 }
 0x77f   :  { %v440_v12 = vsel %vm438_vm13, %v437_v14, 0.0 }
 0x780   :  { %442 = vst [vmem:[%s687_s4 + $0x8] sm:$0xff] %v440_v12 }

</bundles_post_ra>
